<compile_context>
chip_gen: v7x
topology: tpu7x:2x2x1
jax: 0.10.0
libtpu: 0.0.40
codegen_flags: <defaults>
</compile_context>

<pallas_src>
import functools

import jax
import jax.numpy as jnp
from jax.experimental import pallas as pl
from jax.experimental.pallas import tpu as pltpu

LANE = 128                            # node / feature axes padded to lane width
VMEM_LIMIT_BYTES = 48 * 1024 * 1024   # safe on v5e/v6e (128 MiB) and v7x (64 MiB physical)


# ----------------------------------------------------------------------------
# Tiled SAGE layer kernel
# ----------------------------------------------------------------------------
def _sage_layer_kernel(a_ref, xsrc_ref, xdst_ref, invdeg_ref, wl_ref, wr_ref, b_ref,
                       o_ref, acc_ref, *, apply_relu, apply_residual):
    """One grid step. grid = (row tiles of A, reduction tiles over A's columns).

    acc_ref accumulates the un-normalized neighbor-feature sum for the current row tile;
    the epilogue (exact 1/deg, two projections, bias, residual, ReLU) runs at the last
    reduction step only.
    """
    k = pl.program_id(1)

    @pl.when(k == 0)
    def _():
        acc_ref[...] = jnp.zeros_like(acc_ref)

    # Exact integer edge counts streamed as int8 (half the HBM bytes of bf16);
    # cast to bf16 for the MXU (small integers -> exact in bf16).
    a = a_ref[...].astype(jnp.float32).astype(jnp.bfloat16)
    acc_ref[...] += jnp.dot(a, xsrc_ref[...], preferred_element_type=jnp.float32)

    @pl.when(k == pl.num_programs(1) - 1)
    def _():
        # Exact per-row mean applied in f32 (no bf16 quantization of 1/deg).
        aggr = (acc_ref[...] * invdeg_ref[...]).astype(jnp.bfloat16)
        x_i = xdst_ref[...]
        out = (jnp.dot(aggr, wl_ref[...], preferred_element_type=jnp.float32)
               + jnp.dot(x_i, wr_ref[...], preferred_element_type=jnp.float32)
               + b_ref[...])
        if apply_residual:                 # only when out_dim == in_dim (PyTorch guard)
            out = out + x_i.astype(jnp.float32)
        if apply_relu:                     # all but last layer; dropout = identity (eval)
            out = jnp.maximum(out, 0.0)
        o_ref[...] = out.astype(o_ref.dtype)


def _sage_layer(a_i8, inv_deg, x_pad, wl_p, wr_p, b_p, *, apply_relu, apply_residual,
                out_dtype, tm, tk):
    np_, dp_in = x_pad.shape
    dp_out = wl_p.shape[1]
    grid = (np_ // tm, np_ // tk)
    kernel = functools.partial(_sage_layer_kernel,
                               apply_relu=apply_relu, apply_residual=apply_residual)
    return pl.pallas_call(
        kernel,
        out_shape=jax.ShapeDtypeStruct((np_, dp_out), out_dtype),
        grid_spec=pltpu.PrefetchScalarGridSpec(
            num_scalar_prefetch=0,
            grid=grid,
            in_specs=[
                pl.BlockSpec((tm, tk), lambda i, k: (i, k)),          # A slab (int8, streamed)
                pl.BlockSpec((tk, dp_in), lambda i, k: (k, 0)),       # neighbor features
                pl.BlockSpec((tm, dp_in), lambda i, k: (i, 0)),       # root features (row tile)
                pl.BlockSpec((tm, 1), lambda i, k: (i, 0)),           # exact 1/deg (row tile)
                pl.BlockSpec((dp_in, dp_out), lambda i, k: (0, 0)),   # Wl (resident)
                pl.BlockSpec((dp_in, dp_out), lambda i, k: (0, 0)),   # Wr (resident)
                pl.BlockSpec((1, dp_out), lambda i, k: (0, 0)),       # bias (resident)
            ],
            out_specs=pl.BlockSpec((tm, dp_out), lambda i, k: (i, 0)),
            scratch_shapes=[pltpu.VMEM((tm, dp_in), jnp.float32)],
        ),
        compiler_params=pltpu.CompilerParams(
            dimension_semantics=("parallel", "arbitrary"),
            vmem_limit_bytes=VMEM_LIMIT_BYTES,
        ),
    )(a_i8, x_pad, x_pad, inv_deg, wl_p, wr_p, b_p)


# ----------------------------------------------------------------------------
# Glue: adjacency, parameter init, padding, full forward
# ----------------------------------------------------------------------------
def _round_up(v, m):
    return ((v + m - 1) // m) * m


def _pad_to(arr, shape):
    return jnp.pad(arr, [(0, t - s) for s, t in zip(arr.shape, shape)])


def _pick_tile(np_):
    # Largest of {512, 256, 128} dividing the padded node count; keeps per-step DMA large
    # while respecting v7x's smaller VMEM (review: cap row tiles ~512 there).
    for t in (512, 256, 128):
        if np_ % t == 0:
            return t
    return 128


def build_count_adjacency(edge_index, num_nodes, padded_nodes):
    """Integer edge-count adjacency (exact in int8) + exact per-row inverse degree.

    A[i, j] = #edges j -> i (messages flow src -> dst and are mean-aggregated at dst;
    isolated nodes aggregate to 0, like PyG). Counts are small (<< 127) so int8 is exact."""
    src, dst = edge_index[0], edge_index[1]
    counts = jnp.zeros((padded_nodes, padded_nodes), jnp.float32).at[dst, src].add(1.0)
    deg = counts.sum(axis=1, keepdims=True)
    inv_deg = (1.0 / jnp.maximum(deg, 1.0)).astype(jnp.float32)
    return counts.astype(jnp.int8), inv_deg


def init_params(key, input_dim, hidden_dim, output_dim, num_layers):
    """Parameters mirroring the module's shapes (stored transposed for x @ W^T)."""
    dims = [(input_dim, hidden_dim)]
    for _ in range(num_layers - 2):
        dims.append((hidden_dim, hidden_dim))
    if num_layers > 1:
        dims.append((hidden_dim, output_dim))

    convs, bns = [], []
    for (d_in, d_out) in dims:
        key, k1, k2, k3, k4, k5, k6, k7 = jax.random.split(key, 8)
        scale = 1.0 / jnp.sqrt(jnp.float32(d_in))
        convs.append(dict(
            wl_t=jax.random.normal(k1, (d_in, d_out), jnp.float32) * scale,
            wr_t=jax.random.normal(k2, (d_in, d_out), jnp.float32) * scale,
            bl=jax.random.normal(k3, (d_out,), jnp.float32) * 0.1,
        ))
        bns.append(dict(  # non-trivial running stats to exercise BN folding
            gamma=1.0 + 0.1 * jax.random.normal(k4, (d_out,), jnp.float32),
            beta=0.1 * jax.random.normal(k5, (d_out,), jnp.float32),
            mean=0.1 * jax.random.normal(k6, (d_out,), jnp.float32),
            var=1.0 + 0.1 * jax.random.uniform(k7, (d_out,), jnp.float32),
        ))
    return dict(convs=convs, bns=bns)


def yelp_gnn_forward(params, x, edge_index, *, residual=True, batch_norm=True, eps=1e-5):
    convs, bns = params["convs"], params["bns"]
    num_layers = len(convs)
    n = x.shape[0]

    np_ = _round_up(n, LANE)
    tm = tk = _pick_tile(np_)

    a_i8, inv_deg = build_count_adjacency(edge_index, n, np_)

    row_mask = (jnp.arange(np_) < n)[:, None]
    h = _pad_to(x, (np_, _round_up(x.shape[1], LANE))).astype(jnp.bfloat16)

    for i, c in enumerate(convs):
        d_in, d_out = c["wl_t"].shape
        dp_in, dp_out = _round_up(d_in, LANE), _round_up(d_out, LANE)
        is_last = (i == num_layers - 1)

        wl, wr, b = c["wl_t"], c["wr_t"], c["bl"]
        if batch_norm and not is_last:
            # Fold eval-mode BatchNorm into the layer's weights / bias at trace time.
            bn = bns[i]
            s = bn["gamma"] / jnp.sqrt(bn["var"] + eps)
            wl = wl * s[None, :]
            wr = wr * s[None, :]
            b = (b - bn["mean"]) * s + bn["beta"]

        wl_p = _pad_to(wl, (dp_in, dp_out)).astype(jnp.bfloat16)
        wr_p = _pad_to(wr, (dp_in, dp_out)).astype(jnp.bfloat16)
        b_p = _pad_to(b[None, :], (1, dp_out)).astype(jnp.float32)

        apply_residual = bool(residual) and (i > 0) and (d_out == d_in)
        out_dtype = jnp.float32 if is_last else jnp.bfloat16  # bf16 h between layers

        h = _sage_layer(a_i8, inv_deg, h, wl_p, wr_p, b_p,
                        apply_relu=not is_last, apply_residual=apply_residual,
                        out_dtype=out_dtype, tm=tm, tk=tk)
        if not is_last:
            # Zero padded node rows of h (belt-and-braces: padded A columns are zero anyway,
            # but this keeps the tiling/residual structure robust).
            h = jnp.where(row_mask, h, 0).astype(jnp.bfloat16)

    d_out_final = convs[-1]["wl_t"].shape[1]
    return h[:n, :d_out_final]


# ----------------------------------------------------------------------------
# Pure-JAX f32 reference (unfused, follows the PyTorch forward exactly)
# ----------------------------------------------------------------------------
def reference_forward(params, x, edge_index, *, residual=True, batch_norm=True, eps=1e-5):
    n = x.shape[0]
    src, dst = edge_index[0], edge_index[1]
    a = jnp.zeros((n, n), jnp.float32).at[dst, src].add(1.0)
    a = a / jnp.maximum(a.sum(axis=1, keepdims=True), 1.0)  # row-normalized mean aggregation

    convs, bns = params["convs"], params["bns"]
    h = x
    for i, c in enumerate(convs):
        prev = h
        z = (a @ h) @ c["wl_t"] + c["bl"][None, :] + h @ c["wr_t"]
        if batch_norm and i < len(convs) - 1:
            bn = bns[i]
            z = (z - bn["mean"]) / jnp.sqrt(bn["var"] + eps) * bn["gamma"] + bn["beta"]
        if residual and i > 0 and z.shape[-1] == prev.shape[-1]:
            z = z + prev
        if i < len(convs) - 1:
            z = jnp.maximum(z, 0.0)  # dropout = identity in eval mode
        h = z
    return h


# ----------------------------------------------------------------------------
# Main
# ----------------------------------------------------------------------------
if __name__ == "__main__":
    NUM_NODES = 300      # pads to 384 -> a 3x3 grid of 128-tiles (exercises tiling + reduction)
    NUM_EDGES = 3000     # avg degree ~10 (Yelp-like sparsity)
    INPUT_DIM = 16
    HIDDEN_DIM = 32
    OUTPUT_DIM = 16
    NUM_LAYERS = 2

    key = jax.random.PRNGKey(0)
    kx, ke, kp = jax.random.split(key, 3)

    x = jax.random.normal(kx, (NUM_NODES, INPUT_DIM), jnp.float32)
    edge_index = jax.random.randint(ke, (2, NUM_EDGES), 0, NUM_NODES, dtype=jnp.int32)
    params = init_params(kp, INPUT_DIM, HIDDEN_DIM, OUTPUT_DIM, NUM_LAYERS)

    out = yelp_gnn_forward(params, x, edge_index)
    out = jax.block_until_ready(out)

    assert out.shape == (NUM_NODES, OUTPUT_DIM), out.shape
    assert out.dtype == jnp.float32

    ref = reference_forward(params, x, edge_index)
    max_err = float(jnp.max(jnp.abs(out - ref)))
    assert bool(jnp.allclose(out, ref, atol=5e-2, rtol=5e-2)), f"mismatch, max_err={max_err}"

    print("KERNEL_OK")
</pallas_src>

<mosaic_0001>
module attributes {stable_mosaic.version = 11 : i64} {
  func.func @_sage_layer_kernel(%arg0: i32, %arg1: i32, %arg2: memref<128x128xi8, #tpu.memory_space<vmem>>, %arg3: memref<128x128xbf16, #tpu.memory_space<vmem>>, %arg4: memref<128x128xbf16, #tpu.memory_space<vmem>>, %arg5: memref<128x1xf32, #tpu.memory_space<vmem>>, %arg6: memref<128x128xbf16, #tpu.memory_space<vmem>>, %arg7: memref<128x128xbf16, #tpu.memory_space<vmem>>, %arg8: memref<1x128xf32, #tpu.memory_space<vmem>>, %arg9: memref<128x128xbf16, #tpu.memory_space<vmem>>, %arg10: memref<128x128xf32, #tpu.memory_space<vmem>>) attributes {dimension_semantics = [#tpu.dimension_semantics<parallel>, #tpu.dimension_semantics<arbitrary>], iteration_bounds = array<i64: 3, 3>, scalar_prefetch = 0 : i64, scratch_operands = 1 : i64, tpu.core_type = #tpu.core_type<tc>, window_params = [{transform_indices = @transform_0, window_bounds = array<i64: 128, 128>}, {transform_indices = @transform_1, window_bounds = array<i64: 128, 128>}, {transform_indices = @transform_2, window_bounds = array<i64: 128, 128>}, {transform_indices = @transform_3, window_bounds = array<i64: 128, 1>}, {pipeline_mode = #tpu.pipeline_mode<synchronous>, transform_indices = @transform_4, window_bounds = array<i64: 128, 128>}, {pipeline_mode = #tpu.pipeline_mode<synchronous>, transform_indices = @transform_5, window_bounds = array<i64: 128, 128>}, {pipeline_mode = #tpu.pipeline_mode<synchronous>, transform_indices = @transform_6, window_bounds = array<i64: 1, 128>}, {transform_indices = @transform_7, window_bounds = array<i64: 128, 128>}]} {
    %c0_i32 = arith.constant 0 : i32
    %0 = arith.cmpi eq, %arg1, %c0_i32 : i32
    %1 = arith.extui %0 : i1 to i32
    %c0_i32_0 = arith.constant 0 : i32
    %2 = arith.cmpi ne, %1, %c0_i32_0 : i32
    scf.if %2 {
      %cst_9 = arith.constant 0.000000e+00 : f32
      %14 = vector.broadcast %cst_9 : f32 to vector<128x128xf32>
      %c0_10 = arith.constant 0 : index
      %c0_11 = arith.constant 0 : index
      %15 = vector.load %arg10[%c0_10, %c0_11] : memref<128x128xf32, #tpu.memory_space<vmem>>, vector<128x128xf32>
      tpu.vector_store %arg10[%c0_10, %c0_11], %14 {strides = array<i32>} : memref<128x128xf32, #tpu.memory_space<vmem>>, vector<128x128xf32>,
    } else {
    }
    %c0 = arith.constant 0 : index
    %c0_1 = arith.constant 0 : index
    %3 = vector.load %arg2[%c0, %c0_1] : memref<128x128xi8, #tpu.memory_space<vmem>>, vector<128x128xi8>
    %4 = arith.sitofp %3 : vector<128x128xi8> to vector<128x128xf32>
    %5 = arith.truncf %4 : vector<128x128xf32> to vector<128x128xbf16>
    %c0_2 = arith.constant 0 : index
    %c0_3 = arith.constant 0 : index
    %6 = vector.load %arg10[%c0_2, %c0_3] : memref<128x128xf32, #tpu.memory_space<vmem>>, vector<128x128xf32>
    %c0_4 = arith.constant 0 : index
    %c0_5 = arith.constant 0 : index
    %7 = vector.load %arg3[%c0_4, %c0_5] : memref<128x128xbf16, #tpu.memory_space<vmem>>, vector<128x128xbf16>
    %cst = arith.constant dense<0.000000e+00> : vector<128x128xf32>
    %8 = tpu.matmul %5, %7, %cst {dimension_numbers = #tpu.dot_dimension_numbers<[1], [0], [0], [1], [0, 0, 1, 1], [], []>} : vector<128x128xbf16>, vector<128x128xbf16>, vector<128x128xf32> -> vector<128x128xf32>
    %9 = arith.addf %6, %8 : vector<128x128xf32>
    %c0_6 = arith.constant 0 : index
    %c0_7 = arith.constant 0 : index
    %10 = vector.load %arg10[%c0_6, %c0_7] : memref<128x128xf32, #tpu.memory_space<vmem>>, vector<128x128xf32>
    tpu.vector_store %arg10[%c0_6, %c0_7], %9 {strides = array<i32>} : memref<128x128xf32, #tpu.memory_space<vmem>>, vector<128x128xf32>,
    %c2_i32 = arith.constant 2 : i32
    %11 = arith.cmpi eq, %arg1, %c2_i32 : i32
    %12 = arith.extui %11 : i1 to i32
    %c0_i32_8 = arith.constant 0 : i32
    %13 = arith.cmpi ne, %12, %c0_i32_8 : i32
    scf.if %13 {
      %c0_9 = arith.constant 0 : index
      %c0_10 = arith.constant 0 : index
      %14 = vector.load %arg10[%c0_9, %c0_10] : memref<128x128xf32, #tpu.memory_space<vmem>>, vector<128x128xf32>
      %c0_11 = arith.constant 0 : index
      %c0_12 = arith.constant 0 : index
      %15 = vector.load %arg5[%c0_11, %c0_12] : memref<128x1xf32, #tpu.memory_space<vmem>>, vector<128x1xf32>
      %16 = vector.broadcast %15 : vector<128x1xf32> to vector<128x128xf32>
      %17 = arith.mulf %14, %16 : vector<128x128xf32>
      %18 = arith.truncf %17 : vector<128x128xf32> to vector<128x128xbf16>
      %c0_13 = arith.constant 0 : index
      %c0_14 = arith.constant 0 : index
      %19 = vector.load %arg4[%c0_13, %c0_14] : memref<128x128xbf16, #tpu.memory_space<vmem>>, vector<128x128xbf16>
      %c0_15 = arith.constant 0 : index
      %c0_16 = arith.constant 0 : index
      %20 = vector.load %arg6[%c0_15, %c0_16] : memref<128x128xbf16, #tpu.memory_space<vmem>>, vector<128x128xbf16>
      %cst_17 = arith.constant dense<0.000000e+00> : vector<128x128xf32>
      %21 = tpu.matmul %18, %20, %cst_17 {dimension_numbers = #tpu.dot_dimension_numbers<[1], [0], [0], [1], [0, 0, 1, 1], [], []>} : vector<128x128xbf16>, vector<128x128xbf16>, vector<128x128xf32> -> vector<128x128xf32>
      %c0_18 = arith.constant 0 : index
      %c0_19 = arith.constant 0 : index
      %22 = vector.load %arg7[%c0_18, %c0_19] : memref<128x128xbf16, #tpu.memory_space<vmem>>, vector<128x128xbf16>
      %cst_20 = arith.constant dense<0.000000e+00> : vector<128x128xf32>
      %23 = tpu.matmul %19, %22, %cst_20 {dimension_numbers = #tpu.dot_dimension_numbers<[1], [0], [0], [1], [0, 0, 1, 1], [], []>} : vector<128x128xbf16>, vector<128x128xbf16>, vector<128x128xf32> -> vector<128x128xf32>
      %24 = arith.addf %21, %23 : vector<128x128xf32>
      %c0_21 = arith.constant 0 : index
      %c0_22 = arith.constant 0 : index
      %25 = vector.load %arg8[%c0_21, %c0_22] : memref<1x128xf32, #tpu.memory_space<vmem>>, vector<1x128xf32>
      %26 = vector.broadcast %25 : vector<1x128xf32> to vector<128x128xf32>
      %27 = arith.addf %24, %26 : vector<128x128xf32>
      %cst_23 = arith.constant 0.000000e+00 : f32
      %28 = vector.broadcast %cst_23 : f32 to vector<128x128xf32>
      %29 = arith.maximumf %27, %28 : vector<128x128xf32>
      %30 = arith.truncf %29 : vector<128x128xf32> to vector<128x128xbf16>
      %c0_24 = arith.constant 0 : index
      %c0_25 = arith.constant 0 : index
      %31 = vector.load %arg9[%c0_24, %c0_25] : memref<128x128xbf16, #tpu.memory_space<vmem>>, vector<128x128xbf16>
      tpu.vector_store %arg9[%c0_24, %c0_25], %30 {strides = array<i32>} : memref<128x128xbf16, #tpu.memory_space<vmem>>, vector<128x128xbf16>,
    } else {
    }
    return
  }
  func.func @transform_0(%arg0: i32, %arg1: i32) -> (i32, i32) {
    %c0_i32 = arith.constant 0 : i32
    return %arg0, %arg1 : i32, i32
  }
  func.func @transform_1(%arg0: i32, %arg1: i32) -> (i32, i32) {
    %c0_i32 = arith.constant 0 : i32
    %c0_i32_0 = arith.constant 0 : i32
    return %arg1, %c0_i32 : i32, i32
  }
  func.func @transform_2(%arg0: i32, %arg1: i32) -> (i32, i32) {
    %c0_i32 = arith.constant 0 : i32
    %c0_i32_0 = arith.constant 0 : i32
    return %arg0, %c0_i32 : i32, i32
  }
  func.func @transform_3(%arg0: i32, %arg1: i32) -> (i32, i32) {
    %c0_i32 = arith.constant 0 : i32
    %c0_i32_0 = arith.constant 0 : i32
    return %arg0, %c0_i32 : i32, i32
  }
  func.func @transform_4(%arg0: i32, %arg1: i32) -> (i32, i32) {
    %c0_i32 = arith.constant 0 : i32
    %c0_i32_0 = arith.constant 0 : i32
    %c0_i32_1 = arith.constant 0 : i32
    return %c0_i32, %c0_i32_0 : i32, i32
  }
  func.func @transform_5(%arg0: i32, %arg1: i32) -> (i32, i32) {
    %c0_i32 = arith.constant 0 : i32
    %c0_i32_0 = arith.constant 0 : i32
    %c0_i32_1 = arith.constant 0 : i32
    return %c0_i32, %c0_i32_0 : i32, i32
  }
  func.func @transform_6(%arg0: i32, %arg1: i32) -> (i32, i32) {
    %c0_i32 = arith.constant 0 : i32
    %c0_i32_0 = arith.constant 0 : i32
    %c0_i32_1 = arith.constant 0 : i32
    return %c0_i32, %c0_i32_0 : i32, i32
  }
  func.func @transform_7(%arg0: i32, %arg1: i32) -> (i32, i32) {
    %c0_i32 = arith.constant 0 : i32
    %c0_i32_0 = arith.constant 0 : i32
    return %arg0, %c0_i32 : i32, i32
  }
}

</mosaic_0001>

<bundles_post_ra>
// kernel: tpu_custom_call.1
= control target key start
LH: loop header
LB: loop body
LE: loop exit
PB: predicated region body
PF: predicated region fallthrough
CT: control target
= control target key end

     0   :  { %s2761_s0 = inlined_call_operand.vmem [shape: s8[384,384], index: 0, kind: input, shape index: {}]   ;;  %s2762_s1 = inlined_call_operand.hbm [shape: bf16[384,128], index: 1, kind: input, shape index: {}]   ;;  %s2763_s2 = inlined_call_operand.hbm [shape: bf16[384,128], index: 2, kind: input, shape index: {}]   ;;  %s2764_s3 = inlined_call_operand.vmem [shape: f32[384,1], index: 3, kind: input, shape index: {}]   ;;  %s2765_s4 = inlined_call_operand.vmem [shape: bf16[128,128], index: 4, kind: input, shape index: {}]   ;;  %s2766_s5 = inlined_call_operand.hbm [shape: bf16[128,128], index: 5, kind: input, shape index: {}]   ;;  %s2767_s6 = inlined_call_operand.vmem [shape: f32[1,128], index: 6, kind: input, shape index: {}]   ;;  %s2768_s7 = inlined_call_operand.hbm [shape: bf16[384,128], index: 7, kind: output, shape index: {}]  }
   0x1   :  { %2788 = sst [smem:[#allocation27_spill]] %s2764_s3 }
   0x2   :  { %2789 = sst [smem:[#allocation28_spill]] %s2765_s4 }
   0x3   :  { %2790 = sst [smem:[#allocation29_spill]] %s2767_s6 }
   0x4   :  { %2791 = sst [smem:[#allocation30_spill]] %s2768_s7 }
   0x5   :  { %12 = vsyncpa [#allocation5], 0 }
   0x6   :  { %14 = vsyncpa [#allocation5 + $0x1], 0 }
   0x7   :  { %15 = vsyncpa [#allocation8], 0 }
   0x8   :  { %17 = vsyncpa [#allocation8 + $0x1], 0 }
   0x9   :  { %18 = vsyncpa [#allocation6], 0 }
   0xa   :  { %20 = vsyncpa [#allocation6 + $0x1], 0  ;;  %s2283_s24 = smov 0   ;;  %s2285_s25 = smov 0  }
   0xb   :  { %s2287_s26 = smov 0   ;;  %s2289_s27 = smov 0  }
   0xc   :  { %s2291_s28 = smov 0   ;;  %s2293_s29 = smov 0  }
   0xd   :  { %s2295_s30 = smov 0   ;;  %s2297_s8 = smov 0  }
   0xe   :  { %s2299_s9 = smov 0   ;;  %s2301_s10 = smov 0  }
   0xf   :  { %s2303_s11 = smov 0   ;;  %s2305_s12 = smov 0  }
  0x10   :  { %s2307_s13 = smov 0  }
  0x11 LB: > { %2792 = sst [smem:[#allocation15_spill]] %s2181_s24  ;;  %s2349_s14 = sadd.s32 4294967295, %s2229_s13   ;;  %s2229_s13 = sphi %s2307_s13, %s26_s13   ;;  %s2225_s12 = sphi %s2305_s12, %s2856_s12   ;;  %s2221_s11 = sphi %s2303_s11, %s2855_s11   ;;  %s2217_s10 = sphi %s2301_s10, %s2854_s10   ;;  %s2213_s9 = sphi %s2299_s9, %s2853_s9   ;;  %s2209_s8 = sphi %s2297_s8, %s2852_s8   ;;  %s2205_s30 = sphi %s2295_s30, %s2851_s30   ;;  %s2201_s29 = sphi %s2293_s29, %s2850_s29   ;;  %s2197_s28 = sphi %s2291_s28, %s2849_s28   ;;  %s2193_s27 = sphi %s2289_s27, %s2848_s27   ;;  %s2189_s26 = sphi %s2287_s26, %s2847_s26   ;;  %s2185_s25 = sphi %s2285_s25, %s2846_s25   ;;  %s2181_s24 = sphi %s2283_s24, %s2840_s24  }
  0x12   : > { %2793 = sst [smem:[#allocation16_spill]] %s2185_s25  ;;  %s35_s16 = sadd.s32 1, %s2221_s11 }
  0x13   : > { %2794 = sst [smem:[#allocation17_spill]] %s2213_s9  ;;  %s38_s17 = sadd.s32 1, %s2225_s12 }
  0x14   : > { %2795 = sst [smem:[#allocation18_spill]] %s2217_s10  ;;  %p36_p0 = scmp.ge.s32.totalorder %s35_s16, 3 }
  0x15   : > { %s47_s18 = sadd.s32 1, %s2209_s8  ;;  %p54_p1 = scmp.ne.s32.totalorder %s2209_s8, %s2205_s30 }
  0x16   : > { %p55_p2 = scmp.eq.s32.totalorder %s2229_s13, 0  ;;  %s2858_s16 = smov (%p36_p0, %s35_s16), 0 }
  0x17   : > { %2796 = sst [smem:[#allocation19_spill]] %s2858_s16  ;;  %s2860_s17 = smov (!%p36_p0, %s38_s17), %s2225_s12 }
  0x18   : > { %s43_s19 = ssub.s32 %s2221_s11, %s2858_s16  ;;  %p2365_p3 = por %p55_p2, %p54_p1 }
  0x19   : > { %p40_p4 = scmp.ge.s32.totalorder %s2860_s17, 3  ;;  %p71_p5 = scmp.eq.s32.totalorder %s43_s19, 0 }
  0x1a   : > { %s2797_s20 = scalar_select %p2365_p3, 1, 0 }
  0x1b   : > { %s73_s21 = sadd.s32 1, %s2201_s29  ;;  %p80_p6 = scmp.ne.s32.totalorder %s2201_s29, %s2197_s28 }
  0x1c   : > { %s2862_s17 = smov (%p40_p4, %s2860_s17), 0  ;;  %p86_p8 = scmp.ne.s32.totalorder %s2197_s28, %s2193_s27 }
  0x1d   : > { %2798 = sst [smem:[#allocation20_spill]] %s2862_s17  ;;  %s42_s23 = ssub.s32 %s2225_s12, %s2862_s17 }
  0x1e   : > { %s2375_s22 = scalar_select %p71_p5, %s2201_s29, %s73_s21  }
  0x1f   : > { %p2381_p7 = por %p80_p6, %p55_p2  ;;  %s44_s16 = sor.u32 %s43_s19, %s42_s23 }
  0x20   : > { %2799 = sst [smem:[#allocation21_spill]] %s2375_s22  ;;  %p45_p9 = scmp.eq.s32.totalorder %s44_s16, 0 }
  0x21   : > { %s2800_s15 = scalar_select %p2381_p7, 1, 0 }
  0x22   : > { %p2773_p10 = scmp.eq.s32.totalorder %s2349_s14, 0  ;;  %p97_p11 = scmp.eq.s32.totalorder %s42_s23, 0 }
  0x23   : > { %s99_s7 = sadd.s32 1, %s2189_s26  ;;  %p106_p13 = scmp.ne.s32.totalorder %s2189_s26, %s2185_s25 }
  0x24   : > { %s2390_s6 = scalar_select %p45_p9, %s2209_s8, %s47_s18  }
  0x25   : > { %p2394_p12 = por %p2773_p10, %p86_p8  ;;  %p2405_p0 = por %p106_p13, %p55_p2 }
  0x26   : > { %2801 = sst [smem:[#allocation22_spill]] %s2390_s6  ;;  %p112_p1 = scmp.ne.s32.totalorder %s2185_s25, %s2181_s24 }
  0x27   : > { %s2802_s21 = scalar_select %p2394_p12, 1, 0 }
  0x28   : > { %s2401_s17 = scalar_select %p97_p11, %s2189_s26, %s99_s7  }
  0x29   : > { %s2804_s19 = scalar_select %p2405_p0, 1, 0 }
  0x2a   : > { %2803 = sst [smem:[#allocation23_spill]] %s2401_s17  ;;  %p225_p4 = scmp.eq.s32.totalorder %s2349_s14, 8 }
  0x2b   : > { %s2805_s27 = sadd.s32 4294967294, %s2229_s13   ;;  %p2416_p6 = por %p112_p1, %p2773_p10 }
  0x2c   : > { %p231_p5 = scmp.eq.s32.totalorder %s2805_s27, 8  ;;  %p1511_p8 = scmp.ge.s32.totalorder %s2229_s13, 1 }
  0x2d   : > { %s2806_s16 = scalar_select %p2416_p6, 1, 0 }
  0x2e   : > { %p2421_p9 = por %p225_p4, %p106_p13  ;;  %p2425_p11 = por %p231_p5, %p112_p1 }
  0x2f   : > { %2807 = sst [smem:[#allocation24_spill]] %s2806_s16  ;;  %p238_p2 = scmp.lt.s32.totalorder %s2229_s13, 10 }
  0x30   : > { %s2808_s18 = scalar_select %p2421_p9, 1, 0 }
  0x31   : > { %s2810_s7 = scalar_select %p2425_p11, 1, 0 }
  0x32   : > { %2809 = sst [smem:[#allocation25_spill]] %s2808_s18  ;;  %p2430_p12 = pnand %p1511_p8, %p238_p2 }
  0x33   : > { %2811 = sst [smem:[#allocation26_spill]] %s2810_s7  ;;  %s2231_s27 = smov [#allocation9]  }
  0x34   : > { %s2812_s23 = scalar_select %p2430_p12, 1, 0 }
  0x35   : > { %s253_s6 = sshll.u32 %s2231_s27, 4  ;;  %p1841_p10 = pneg %p2430_p12  ;;  %s254_s6 = int_to_ptr.vmem [resolvable:$true] %s253_s6 }
  0x36   : > { %p2813_p6 = scmp.eq.s32.totalorder %s2349_s14, 0  ;;  %s1999_s7 = scalar_lea.hbm %s2766_s5, 1024 }
  0x37   : > { %p2000_p1 = scmp.ne.s32.totalorder %s2766_s5, %s1999_s7 }
  0x38   : > { %p2438_p13 = pnand %p1841_p10, %p2813_p6  ;;  %p2006_p10 = scmp.lt.u32.totalorder %s1999_s7, %s2766_s5 }
  0x3a   : > { %p2001_p4 = pneg %p2438_p13 }
  0x3c   : > { %p2002_p5 = pnand %p2001_p4, %p2000_p1 }
  0x3e   : > { %p2003_p8 = pneg %p2002_p5 }
  0x40   : > { %p2008_p6 = pnand %p2006_p10, %p2003_p8 }
  0x42   : > { %2011 = shalt.err (!%p2008_p6)
}
  0x43   : > { %s2012_s3 = scalar_lea.vmem %s254_s6, 1024  ;;  %p2020_p12 = scmp.lt.s32.totalorder %s254_s6, %s254_s6 }
  0x44   : > { %p2013_p2 = scmp.ne.s32.totalorder %s254_s6, %s2012_s3  ;;  %p2021_p0 = scmp.lt.s32.totalorder %s2012_s3, %s2012_s3 }
  0x46   : > { %p2015_p11 = pnand %p2013_p2, %p2001_p4  ;;  %p2022_p7 = por %p2021_p0, %p2020_p12 }
  0x48   : > { %p2016_p9 = pneg %p2015_p11 }
  0x4a   : > { %p2023_p3 = pnand %p2022_p7, %p2016_p9 }
  0x4c   : > { %2026 = shalt.err (!%p2023_p3)
}
  0x4d   : > { %s2232_s4 = smov 64   ;;  %s2233_s24 = smov 4  }
  0x4e   : > { %1844 = dma.hbm_to_vmem [thread:$0]  (!%p2438_p13), %s2766_s5, 1024, %s254_s6, [#allocation8], %s2232_s4, %s2232_s4, %s2233_s24  }
  0x4f   : > { %p1513_p1 = scmp.ge.s32.totalorder %s2229_s13, 9 }
  0x50   : > { %p2815_p5 = scmp.ne.s32.totalorder (!%p1513_p1), %s2797_s20, 0 }
  0x51   : > { %266 = sbr.rel (%p1513_p1) target bundleno = 150 (0x96), region = 28 }
  0x58   : > { %269 = sbr.rel (!%p2815_p5) target bundleno = 97 (0x61), region = 32  ;;  %s271_s3 = sand.u32 (%p2815_p5), 1, %s2209_s8  }
  0x59   : > { %s1830_s9 = smul.u32 (%p2815_p5), 12, %s2225_s12  ;;  %s1514_s7 = sshll.u32 (%p2815_p5), %s271_s3, 5 }
  0x5a   : > { %s273_s6 = scalar_lea.vmem (%p2815_p5), [#allocation3], %s1514_s7 }
  0x5b   : > { %s276_s27 = sadd.s32 (%p2815_p5), %s2221_s11, %s1830_s9 }
  0x5c   : > { %s1517_s10 = sshll.u32 (%p2815_p5), %s276_s27, 3 }
  0x5d   : > { %s278_s25 = scalar_lea.vmem (%p2815_p5), %s2761_s0, %s1517_s10 }
  0x5e   : > { %v312_v0 = vld [vmem:[%s278_s25] sm:$0xff] (%p2815_p5)  ;;  %v314_v1 = vld [vmem:[%s278_s25 + $0x18] sm:$0xff] (%p2815_p5)  ;;  %v316_v2 = vld [vmem:[%s278_s25 + $0x30] sm:$0xff] (%p2815_p5) }
  0x5f   : > { %313 = vst [vmem:[%s273_s6] sm:$0xff] %v312_v0  ;;  %315 = vst [vmem:[%s273_s6 + $0x8] sm:$0xff] %v314_v1  ;;  %v318_v3 = vld [vmem:[%s278_s25 + $0x48] sm:$0xff] }
  0x60   : > { %317 = vst [vmem:[%s273_s6 + $0x10] sm:$0xff] %v316_v2  ;;  %319 = vst [vmem:[%s273_s6 + $0x18] sm:$0xff] %v318_v3 }
  0x61 PF: > { %s326_s20 = sand.u32 1, %s2201_s29   ;;  %s1588_s4 = sshll.u32 %s2221_s11, 10 }
  0x62   : > { %s1518_s24 = sshll.u32 %s326_s20, 6  ;;  %s2472_s10 = scalar_lea.hbm %s2762_s1, %s1588_s4 }
  0x63   : > { %s330_s16 = scalar_lea.vmem [#allocation4], %s1518_s24  ;;  %s2476_s25 = scalar_lea.sflag [#allocation5], %s326_s20 }
  0x64   : > { %s337_s3 = sshll.u32 %s330_s16, 4  ;;  %s2027_s9 = scalar_lea.hbm %s2472_s10, 1024  ;;  %s2474_s3 = int_to_ptr.vmem [resolvable:$true] %s337_s3 }
  0x65   : > { %p2028_p3 = scmp.ne.s32.totalorder %s2472_s10, %s2027_s9  ;;  %p2816_p7 = scmp.ne.s32.totalorder %s2800_s15, 0 }
  0x66   : > { %s2031_s22 = scalar_lea.hbm %s2762_s1, 3072  ;;  %p2032_p9 = scmp.lt.u32.totalorder %s2472_s10, %s2762_s1 }
  0x67   : > { %p2029_p12 = pnand %p2028_p3, %p2816_p7  ;;  %p2033_p11 = scmp.lt.u32.totalorder %s2031_s22, %s2027_s9 }
  0x68   : > { %p2035_p4 = scmp.lt.u32.totalorder %s2027_s9, %s2472_s10 }
  0x69   : > { %p2030_p0 = pneg %p2029_p12  ;;  %p2034_p13 = por %p2033_p11, %p2032_p9 }
  0x6b   : > { %p2036_p8 = por %p2035_p4, %p2034_p13 }
  0x6d   : > { %p2037_p10 = pnand %p2036_p8, %p2030_p0 }
  0x6f   : > { %2040 = shalt.err (!%p2037_p10)
}
  0x70   : > { %s2041_s20 = scalar_lea.vmem %s2474_s3, 1024  ;;  %s2234_s24 = smov [#allocation4]  }
  0x71   : > { %p2042_p6 = scmp.ne.s32.totalorder %s2474_s3, %s2041_s20  ;;  %s2045_s17 = sshll.u32 %s2234_s24, 4  ;;  %s2046_s17 = int_to_ptr.vmem [resolvable:$false] %s2045_s17 }
  0x72   : > { %s2047_s18 = scalar_lea.vmem %s2046_s17, 2048  ;;  %p2048_p5 = scmp.lt.s32.totalorder %s2474_s3, %s2046_s17 }
  0x73   : > { %p2043_p2 = pnand %p2042_p6, %p2816_p7  ;;  %p2049_p3 = scmp.lt.s32.totalorder %s2047_s18, %s2041_s20 }
  0x75   : > { %p2044_p1 = pneg %p2043_p2  ;;  %p2050_p12 = por %p2049_p3, %p2048_p5 }
  0x77   : > { %p2051_p9 = pnand %p2050_p12, %p2044_p1 }
  0x79   : > { %2054 = shalt.err (!%p2051_p9)
}
  0x7a   : > { %s2235_s16 = smov 64   ;;  %s2236_s9 = smov 4  }
  0x7b   : > { %1833 = dma.hbm_to_vmem [thread:$0]  (%p2816_p7), %s2472_s10, 1024, %s2474_s3, %s2476_s25, %s2235_s16, %s2235_s16, %s2236_s9  }
  0x7c   : > { %s347_s7 = sand.u32 1, %s2229_s13   ;;  %s349_s27 = sand.u32 1, %s2189_s26  }
  0x7d   : > { %s1521_s22 = sshll.u32 %s349_s27, 6  ;;  %s1589_s6 = sshll.u32 %s2225_s12, 10 }
  0x7e   : > { %s2509_s24 = scalar_lea.hbm %s2763_s2, %s1589_s6  ;;  %s351_s17 = scalar_lea.vmem [#allocation7], %s1521_s22 }
  0x7f   : > { %s358_s18 = sshll.u32 %s351_s17, 4  ;;  %s2513_s15 = scalar_lea.sflag [#allocation8], %s347_s7  ;;  %s2511_s18 = int_to_ptr.vmem [resolvable:$true] %s358_s18 }
  0x80   : > { %s2055_s10 = scalar_lea.hbm %s2509_s24, 1024  ;;  %p2817_p0 = scmp.ne.s32.totalorder %s2804_s19, 0 }
  0x81   : > { %p2056_p7 = scmp.ne.s32.totalorder %s2509_s24, %s2055_s10  ;;  %s2059_s27 = scalar_lea.hbm %s2763_s2, 3072 }
  0x82   : > { %p2060_p4 = scmp.lt.u32.totalorder %s2509_s24, %s2763_s2  ;;  %p2061_p8 = scmp.lt.u32.totalorder %s2059_s27, %s2055_s10 }
  0x83   : > { %p2057_p11 = pnand %p2056_p7, %p2817_p0  ;;  %p2063_p6 = scmp.lt.u32.totalorder %s2055_s10, %s2509_s24 }
  0x84   : > { %p2062_p10 = por %p2061_p8, %p2060_p4 }
  0x85   : > { %p2058_p13 = pneg %p2057_p11 }
  0x86   : > { %p2064_p2 = por %p2063_p6, %p2062_p10 }
  0x88   : > { %p2065_p1 = pnand %p2064_p2, %p2058_p13 }
  0x8a   : > { %2068 = shalt.err (!%p2065_p1)
}
  0x8b   : > { %s2069_s7 = scalar_lea.vmem %s2511_s18, 1024  ;;  %s2237_s22 = smov [#allocation7]  }
  0x8c   : > { %p2070_p5 = scmp.ne.s32.totalorder %s2511_s18, %s2069_s7  ;;  %s2073_s20 = sshll.u32 %s2237_s22, 4  ;;  %s2074_s20 = int_to_ptr.vmem [resolvable:$false] %s2073_s20 }
  0x8d   : > { %s2075_s17 = scalar_lea.vmem %s2074_s20, 2048  ;;  %p2076_p9 = scmp.lt.s32.totalorder %s2511_s18, %s2074_s20 }
  0x8e   : > { %p2071_p3 = pnand %p2070_p5, %p2817_p0  ;;  %p2077_p7 = scmp.lt.s32.totalorder %s2075_s17, %s2069_s7 }
  0x90   : > { %p2072_p12 = pneg %p2071_p3  ;;  %p2078_p11 = por %p2077_p7, %p2076_p9 }
  0x92   : > { %p2079_p4 = pnand %p2078_p11, %p2072_p12 }
  0x94   : > { %2082 = shalt.err (!%p2079_p4)
}
  0x95   : > { %1834 = dma.hbm_to_vmem [thread:$0]  (%p2817_p0), %s2509_s24, 1024, %s2511_s18, %s2513_s15, %s2235_s16, %s2235_s16, %s2236_s9  }
  0x96 PF: > { %p2818_p13 = scmp.ne.s32.totalorder %s2812_s23, 0 }
  0x97   : > { %s382_s10 = sand.u32 (!%p2818_p13), 1, %s2205_s30   ;;  %s388_s3 = sand.u32 (!%p2818_p13), 1, %s2197_s28  }
  0x98   : > { %379 = sbr.rel (%p2818_p13) target bundleno = 833 (0x341), region = 82  ;;  %s1525_s25 = sshll.u32 (!%p2818_p13), %s382_s10, 5 }
  0x99   : > { %s1526_s27 = sshll.u32 (!%p2818_p13), %s388_s3, 6  ;;  %s2544_s6 = scalar_lea.vmem (!%p2818_p13), [#allocation3], %s1525_s25 }
  0x9a   : > { %s389_s19 = scalar_lea.sflag (!%p2818_p13), [#allocation5], %s388_s3  ;;  %s2546_s4 = scalar_lea.vmem (!%p2818_p13), [#allocation4], %s1526_s27 }
  0x9b   : > { %p2819_p8 = scmp.ne.s32.totalorder (!%p2818_p13), %s2802_s21, 0 }
  0x9f   : > { %2164 = dma.done.wait (%p2819_p8), %s389_s19, 1024  }
  0xa0   : > { %2166 = vsyncadd (%p2819_p8), %s389_s19, 4294966272  ;;  %s2820_s23 = sld [smem:[#allocation16_spill]]  ;;  %s2821_s16 = sld [smem:[#allocation24_spill]] }
  0xa1   : > { %s397_s9 = sand.u32 1, %s2349_s14  }
  0xa2   : > { %s398_s18 = scalar_lea.sflag [#allocation8], %s397_s9 }
  0xa6   : > { %s399_s24 = sand.u32 1, %s2820_s23   ;;  %p2822_p0 = scmp.ne.s32.totalorder %s2821_s16, 0 }
  0xa7   : > { %s1527_s30 = sshll.u32 %s399_s24, 6 }
  0xa8   : > { %s2556_s15 = scalar_lea.vmem [#allocation7], %s1527_s30 }
  0xa9   : > { %2168 = dma.done.wait (%p2822_p0), %s398_s18, 1024  }
  0xaa   : > { %2170 = vsyncadd (%p2822_p0), %s398_s18, 4294966272  ;;  %p2823_p10 = scmp.eq.s32.totalorder %s2349_s14, 0 }
  0xac   : > { %2172 = dma.done.wait (%p2823_p10), [#allocation8], 1024   ;;  %p2824_p6 = pmov %p2823_p10 }
  0xad   : > { %s2825_s21 = sld [smem:[#allocation18_spill]]  ;;  %s2826_s10 = sld [smem:[#allocation27_spill]] }
  0xae   : > { %2174 = vsyncadd (%p2824_p6), [#allocation8], 4294966272  ;;  %s2572_s25 = scalar_lea.vmem [#allocation10], %s1527_s30  ;;  %s2827_s27 = sld [smem:[#allocation17_spill]] }
  0xb3   : > { %s1530_s7 = sshll.u32 %s2825_s21, 4 }
  0xb4   : > { %p454_p2 = scmp.lt.s32.totalorder %s1530_s7, 47  ;;  %p1532_p1 = scmp.ne.s32.totalorder %s2827_s27, 0 }
  0xb5   : > { %v2238_v4 = vmov (!%p1532_p1), 0.0  }
  0xb6   : > { %s2864_s7 = smov (!%p454_p2, %s1530_s7), 47  ;;  %464 = sbr.rel (%p1532_p1) target bundleno = 191 (0xbf), region = 102 }
  0xb7   : > { %s1531_s22 = sshll.u32 %s2864_s7, 3  ;;  %465 = vst [vmem:[#allocation2] sm:$0xff] (!%p1532_p1), %v2238_v4  ;;  %466 = vst [vmem:[#allocation2 + $0x8] sm:$0xff] (!%p1532_p1), %v2238_v4 }
  0xb8   : > { %s2570_s3 = scalar_lea.vmem %s2826_s10, %s1531_s22  ;;  %467 = vst [vmem:[#allocation2 + $0x10] sm:$0xff] (!%p1532_p1), %v2238_v4  ;;  %468 = vst [vmem:[#allocation2 + $0x18] sm:$0xff] (!%p1532_p1), %v2238_v4 }
  0xb9   : > { %469 = vst [vmem:[#allocation2 + $0x20] sm:$0xff] (!%p1532_p1), %v2238_v4  ;;  %470 = vst [vmem:[#allocation2 + $0x28] sm:$0xff] (!%p1532_p1), %v2238_v4 }
  0xba   : > { %471 = vst [vmem:[#allocation2 + $0x30] sm:$0xff] (!%p1532_p1), %v2238_v4  ;;  %472 = vst [vmem:[#allocation2 + $0x38] sm:$0xff] (!%p1532_p1), %v2238_v4 }
  0xbb   : > { %473 = vst [vmem:[#allocation2 + $0x40] sm:$0xff] (!%p1532_p1), %v2238_v4  ;;  %474 = vst [vmem:[#allocation2 + $0x48] sm:$0xff] (!%p1532_p1), %v2238_v4 }
  0xbc   : > { %475 = vst [vmem:[#allocation2 + $0x50] sm:$0xff] (!%p1532_p1), %v2238_v4  ;;  %476 = vst [vmem:[#allocation2 + $0x58] sm:$0xff] (!%p1532_p1), %v2238_v4 }
  0xbd   : > { %477 = vst [vmem:[#allocation2 + $0x60] sm:$0xff] %v2238_v4  ;;  %478 = vst [vmem:[#allocation2 + $0x68] sm:$0xff] %v2238_v4 }
  0xbe   : > { %479 = vst [vmem:[#allocation2 + $0x70] sm:$0xff] %v2238_v4  ;;  %480 = vst [vmem:[#allocation2 + $0x78] sm:$0xff] %v2238_v4 }
  0xbf PF: > { %v1965_v5 = vld [vmem:[%s2546_s4] sm:$0xff]   ;;  %v1966_v6 = vld [vmem:[%s2546_s4 + $0x8] sm:$0xff]   ;;  %v1967_v7 = vld [vmem:[%s2546_s4 + $0x10] sm:$0xff]   ;;  %s2828_s14 = sld [smem:[#allocation17_spill]] }
  0xc0   : > { %1702 = vmatprep.subr.bf16.mxu0 %v1965_v5  ;;  %1798 = vmatprep.subr.bf16.mxu1 %v1965_v5  ;;  %v1968_v8 = vld [vmem:[%s2546_s4 + $0x18] sm:$0xff]   ;;  %v481_v9 = vld [vmem:[%s2544_s6] sm:$0xff]  ;;  %v483_v10 = vld [vmem:[%s2544_s6 + $0x10] sm:$0xff] }
  0xc1   : > { %1703 = vmatpush3.bf16.msra.mxu0 %v1965_v5  ;;  %1806 = vmatpush3.bf16.msra.mxu1 %v1965_v5  ;;  %v485_v11 = vunpack.c.l.s8.bf16 %v481_v9  ;;  %v489_v12 = vunpack.c.l.s8.bf16 %v483_v10  ;;  %v1969_v13 = vld [vmem:[%s2546_s4 + $0x20] sm:$0xff]   ;;  %v1970_v14 = vld [vmem:[%s2546_s4 + $0x28] sm:$0xff]   ;;  %v1971_v15 = vld [vmem:[%s2546_s4 + $0x30] sm:$0xff]   ;;  %v486_v19 = vunpack.c.h.s8.bf16 %v481_v9  ;;  %v490_v20 = vunpack.c.h.s8.bf16 %v483_v10 }
  0xc2   : > { %1704 = vmatprep.subr.bf16.mxu0 %v1966_v6  ;;  %1799 = vmatprep.subr.bf16.mxu1 %v1966_v6  ;;  %v1972_v16 = vld [vmem:[%s2546_s4 + $0x38] sm:$0xff]   ;;  %v482_v17 = vld [vmem:[%s2544_s6 + $0x8] sm:$0xff]  ;;  %v495_v25 = vld [vmem:[#allocation2 + $0x10] sm:$0xff] }
  0xc3   : > { %1718 = vmatprep.mubr.bf16.mxu0 %v485_v11  ;;  %1726 = vmatprep.mubr.bf16.mxu1 %v489_v12  ;;  %v484_v18 = vld [vmem:[%s2544_s6 + $0x18] sm:$0xff]  ;;  %v487_v21 = vunpack.c.l.s8.bf16 %v482_v17  ;;  %v488_v23 = vunpack.c.h.s8.bf16 %v482_v17  ;;  %v493_v27 = vld [vmem:[#allocation2] sm:$0xff]  ;;  %v494_v37 = vld [vmem:[#allocation2 + $0x8] sm:$0xff] }
  0xc4   : > { %v491_v22 = vunpack.c.l.s8.bf16 %v484_v18  ;;  %v492_v24 = vunpack.c.h.s8.bf16 %v484_v18  ;;  %v501_v28 = vld [vmem:[#allocation2 + $0x40] sm:$0xff]  ;;  %v496_v31 = vld [vmem:[#allocation2 + $0x18] sm:$0xff]  ;;  %v502_v38 = vld [vmem:[#allocation2 + $0x48] sm:$0xff] }
  0xc5   : > { %1705 = vmatpush3.bf16.msra.mxu0 %v1966_v6  ;;  %1807 = vmatpush3.bf16.msra.mxu1 %v1966_v6  ;;  %v503_v26 = vld [vmem:[#allocation2 + $0x50] sm:$0xff]  ;;  %v504_v32 = vld [vmem:[#allocation2 + $0x58] sm:$0xff]  ;;  %v497_v51 = vld [vmem:[#allocation2 + $0x20] sm:$0xff]  ;;  %p1541_p5 = scmp.ne.s32.totalorder %s2828_s14, 2 }
  0xc6   : > { %1706 = vmatprep.subr.bf16.mxu0 %v1967_v7  ;;  %1800 = vmatprep.subr.bf16.mxu1 %v1967_v7  ;;  %v499_v49 = vld [vmem:[#allocation2 + $0x30] sm:$0xff]  ;;  %v505_v52 = vld [vmem:[#allocation2 + $0x60] sm:$0xff]  ;;  %v500_v55 = vld [vmem:[#allocation2 + $0x38] sm:$0xff]  ;;  %v2239_v11 = vmov (!%p1541_p5), 0   ;;  %s2829_s4 = sld [smem:[#allocation28_spill]] (!%p1541_p5)  ;;  %s2830_s19 = sld [smem:[#allocation29_spill]] (!%p1541_p5) }
  0xc7   : > { %v507_v50 = vld [vmem:[#allocation2 + $0x70] sm:$0xff]  ;;  %v508_v56 = vld [vmem:[#allocation2 + $0x78] sm:$0xff]  ;;  %v498_v61 = vld [vmem:[#allocation2 + $0x28] sm:$0xff]  ;;  %1974 = vset.pattern.permute.xlu1 (!%p1541_p5), %v2239_v11  ;;  %1973 = vset.pattern.permute.xlu0 (!%p1541_p5), %v2239_v11 }
  0xc8   : > { %v506_v62 = vld [vmem:[#allocation2 + $0x68] sm:$0xff]  ;;  %v724_v9 = vld [vmem:[%s2570_s3 + $0x10] sm:$0xff] (!%p1541_p5)  ;;  %v722_v10 = vld [vmem:[%s2570_s3] sm:$0xff] (!%p1541_p5) }
  0xc9   : > { %1707 = vmatpush3.bf16.msra.mxu0 %v1967_v7  ;;  %1808 = vmatpush3.bf16.msra.mxu1 %v1967_v7  ;;  %v725_v12 = vld [vmem:[%s2570_s3 + $0x18] sm:$0xff] (!%p1541_p5)  ;;  %v1977_v18 = vld [vmem:[#allocation9 + $0x8] sm:$0xff] (!%p1541_p5)  }
  0xca   : > { %1708 = vmatprep.subr.bf16.mxu0 %v1968_v8  ;;  %1801 = vmatprep.subr.bf16.mxu1 %v1968_v8 }
  0xcb   : > { %750 = vperm.xlu1 (!%p1541_p5), %1974, %v724_v9   ;;  %740 = vperm.xlu0 (!%p1541_p5), %1973, %v722_v10  }
  0xcc   : > { %v1976_v17 = vld [vmem:[%s2829_s4] sm:$0xff] (!%p1541_p5)  }
  0xcd   : > { %1709 = vmatpush3.bf16.msra.mxu0 %v1968_v8  ;;  %1809 = vmatpush3.bf16.msra.mxu1 %v1968_v8 }
  0xce   : > { %1710 = vmatprep.subr.bf16.mxu0 %v1969_v13  ;;  %1802 = vmatprep.subr.bf16.mxu1 %v1969_v13 }
  0xcf   : > { %755 = vperm.xlu1 (!%p1541_p5), %1974, %v725_v12  }
  0xd1   : > { %1711 = vmatpush3.bf16.msra.mxu0 %v1969_v13  ;;  %1810 = vmatpush3.bf16.msra.mxu1 %v1969_v13  ;;  %v723_v13 = vld [vmem:[%s2570_s3 + $0x8] sm:$0xff] (!%p1541_p5) }
  0xd2   : > { %1712 = vmatprep.subr.bf16.mxu0 %v1970_v14  ;;  %1803 = vmatprep.subr.bf16.mxu1 %v1970_v14 }
  0xd3   : > { %745 = vperm.xlu0 (!%p1541_p5), %1973, %v723_v13  }
  0xd5   : > { %1713 = vmatpush3.bf16.msra.mxu0 %v1970_v14  ;;  %1811 = vmatpush3.bf16.msra.mxu1 %v1970_v14  ;;  %v727_v14 = vld [vmem:[%s2570_s3 + $0x28] sm:$0xff] (!%p1541_p5) }
  0xd6   : > { %1714 = vmatprep.subr.bf16.mxu0 %v1971_v15  ;;  %1804 = vmatprep.subr.bf16.mxu1 %v1971_v15 }
  0xd7   : > { %765 = vperm.xlu1 (!%p1541_p5), %1974, %v727_v14  }
  0xd9   : > { %1715 = vmatpush3.bf16.msra.mxu0 %v1971_v15  ;;  %1812 = vmatpush3.bf16.msra.mxu1 %v1971_v15  ;;  %v726_v15 = vld [vmem:[%s2570_s3 + $0x20] sm:$0xff] (!%p1541_p5) }
  0xda   : > { %1716 = vmatprep.subr.bf16.mxu0 %v1972_v16  ;;  %1805 = vmatprep.subr.bf16.mxu1 %v1972_v16 }
  0xdb   : > { %760 = vperm.xlu0 (!%p1541_p5), %1973, %v726_v15  }
  0xdd   : > { %1717 = vmatpush3.bf16.msra.mxu0 %v1972_v16  ;;  %1813 = vmatpush3.bf16.msra.mxu1 %v1972_v16  ;;  %v1975_v16 = vld [vmem:[#allocation9] sm:$0xff] (!%p1541_p5)  }
  0xde   : > { %1734 = vmatprep.subr.bf16.mxu1 (!%p1541_p5), %v1975_v16  ;;  %1766 = vmatprep.subr.bf16.mxu0 (!%p1541_p5), %v1976_v17 }
  0xe0   : > { %1719 = vmatmul.mubr.bf16.vlgmr.msra.gmra.mrb[0].mxu0 %v486_v19  ;;  %1727 = vmatmul.mubr.bf16.vlgmr.msra.gmra.mrb[0].mxu1 %v490_v20  ;;  %v729_v19 = vld [vmem:[%s2570_s3 + $0x38] sm:$0xff] (!%p1541_p5)  ;;  %v1978_v20 = vld [vmem:[%s2829_s4 + $0x8] sm:$0xff] (!%p1541_p5)  }
  0xe1   : > { %1722 = vmatprep.mubr.bf16.mxu0 %v487_v21  ;;  %1730 = vmatprep.mubr.bf16.mxu1 %v491_v22  ;;  %v728_v21 = vld [vmem:[%s2570_s3 + $0x30] sm:$0xff] (!%p1541_p5) }
  0xe2   : > { %1735 = vmatpush3.bf16.msra.mxu1 (!%p1541_p5), %v1975_v16  ;;  %1767 = vmatpush3.bf16.msra.mxu0 (!%p1541_p5), %v1976_v17  ;;  %v1979_v22 = vld [vmem:[#allocation9 + $0x10] sm:$0xff] (!%p1541_p5)  }
  0xe3   : > { %1736 = vmatprep.subr.bf16.mxu1 (!%p1541_p5), %v1977_v18  ;;  %1768 = vmatprep.subr.bf16.mxu0 (!%p1541_p5), %v1978_v20 }
  0xe4   : > { %775 = vperm.xlu1 (!%p1541_p5), %1974, %v729_v19   ;;  %770 = vperm.xlu0 (!%p1541_p5), %1973, %v728_v21  }
  0xe6   : > { %1737 = vmatpush3.bf16.msra.mxu1 (!%p1541_p5), %v1977_v18  ;;  %1769 = vmatpush3.bf16.msra.mxu0 (!%p1541_p5), %v1978_v20 }
  0xe7   : > { %1738 = vmatprep.subr.bf16.mxu1 (!%p1541_p5), %v1979_v22 }
  0xe8   : > { %1723 = vmatmul.mubr.bf16.gmra.mrb[4].mxu0 %v488_v23  ;;  %1731 = vmatmul.mubr.bf16.gmra.mrb[4].mxu1 %v492_v24  ;;  %v1980_v23 = vld [vmem:[%s2829_s4 + $0x10] sm:$0xff] (!%p1541_p5)   ;;  %v731_v24 = vld [vmem:[%s2570_s3 + $0x48] sm:$0xff] (!%p1541_p5) }
  0xe9   : > { %1770 = vmatprep.subr.bf16.mxu0 (!%p1541_p5), %v1980_v23  ;;  %785 = vperm.xlu1 (!%p1541_p5), %1974, %v731_v24  }
  0xea   : > { %1739 = vmatpush3.bf16.msra.mxu1 (!%p1541_p5), %v1979_v22  ;;  %1771 = vmatpush3.bf16.msra.mxu0 (!%p1541_p5), %v1980_v23 }
 0x1b3   : > { %v1720_v29 = vpop.f32.mrb[0].mxu0  ;;  %v1728_v30 = vpop.f32.mrb[0].mxu1 }
 0x1b4   : > { %v672_v33 = vadd.f32 %v1720_v29, %v495_v25  ;;  %v680_v34 = vadd.f32 %v1728_v30, %v503_v26  ;;  %v607_v35 = vpop.f32.mrb[1].mxu0  ;;  %v639_v36 = vpop.f32.mrb[1].mxu1  ;;  %v730_v25 = vld [vmem:[%s2570_s3 + $0x40] sm:$0xff] (!%p1541_p5)  ;;  %v1981_v26 = vld [vmem:[#allocation9 + $0x18] sm:$0xff] (!%p1541_p5)   ;;  %v732_v29 = vld [vmem:[%s2570_s3 + $0x50] sm:$0xff] (!%p1541_p5) }
 0x1b5   : > { %v670_v39 = vadd.f32 %v607_v35, %v493_v27  ;;  %v678_v40 = vadd.f32 %v639_v36, %v501_v28  ;;  %v1721_v41 = vpop.f32.mrb[2].mxu0  ;;  %v1729_v42 = vpop.f32.mrb[2].mxu1  ;;  %v1982_v27 = vld [vmem:[%s2829_s4 + $0x18] sm:$0xff] (!%p1541_p5)   ;;  %780 = vperm.xlu0 (!%p1541_p5), %1973, %v730_v25   ;;  %1740 = vmatprep.subr.bf16.mxu1 (!%p1541_p5), %v1981_v26  ;;  %v1983_v30 = vld [vmem:[#allocation9 + $0x20] sm:$0xff] (!%p1541_p5)   ;;  %v1985_v35 = vld [vmem:[#allocation9 + $0x28] sm:$0xff] (!%p1541_p5)  }
 0x1b6   : > { %688 = vst [vmem:[#allocation2 + $0x10] sm:$0xff] %v672_v33  ;;  %696 = vst [vmem:[#allocation2 + $0x50] sm:$0xff] %v680_v34  ;;  %v673_v43 = vadd.f32 %v1721_v41, %v496_v31  ;;  %v681_v44 = vadd.f32 %v1729_v42, %v504_v32  ;;  %v610_v45 = vpop.f32.mrb[3].mxu0  ;;  %v642_v46 = vpop.f32.mrb[3].mxu1  ;;  %v733_v28 = vld [vmem:[%s2570_s3 + $0x58] sm:$0xff] (!%p1541_p5)  ;;  %1772 = vmatprep.subr.bf16.mxu0 (!%p1541_p5), %v1982_v27  ;;  %v1984_v31 = vld [vmem:[%s2829_s4 + $0x20] sm:$0xff] (!%p1541_p5)   ;;  %1741 = vmatpush3.bf16.msra.mxu1 (!%p1541_p5), %v1981_v26 }
 0x1b7   : > { %686 = vst [vmem:[#allocation2] sm:$0xff] %v670_v39  ;;  %694 = vst [vmem:[#allocation2 + $0x40] sm:$0xff] %v678_v40  ;;  %v671_v47 = vadd.f32 %v610_v45, %v494_v37  ;;  %v679_v48 = vadd.f32 %v642_v46, %v502_v38  ;;  %v735_v32 = vld [vmem:[%s2570_s3 + $0x68] sm:$0xff] (!%p1541_p5)  ;;  %v734_v33 = vld [vmem:[%s2570_s3 + $0x60] sm:$0xff] (!%p1541_p5)  ;;  %795 = vperm.xlu1 (!%p1541_p5), %1974, %v733_v28   ;;  %1742 = vmatprep.subr.bf16.mxu1 (!%p1541_p5), %v1983_v30 }
 0x1b8   : > { %689 = vst [vmem:[#allocation2 + $0x18] sm:$0xff] %v673_v43  ;;  %697 = vst [vmem:[#allocation2 + $0x58] sm:$0xff] %v681_v44  ;;  %v1990_v34 = vld [vmem:[%s2556_s15] sm:$0xff] (!%p1541_p5)   ;;  %1773 = vmatpush3.bf16.msra.mxu0 (!%p1541_p5), %v1982_v27  ;;  %v1986_v36 = vld [vmem:[%s2829_s4 + $0x28] sm:$0xff] (!%p1541_p5)  }
 0x1b9   : > { %687 = vst [vmem:[#allocation2 + $0x8] sm:$0xff] %v671_v47  ;;  %695 = vst [vmem:[#allocation2 + $0x48] sm:$0xff] %v679_v48  ;;  %790 = vperm.xlu0 (!%p1541_p5), %1973, %v732_v29   ;;  %1774 = vmatprep.subr.bf16.mxu0 (!%p1541_p5), %v1984_v31  ;;  %v737_v37 = vld [vmem:[%s2570_s3 + $0x78] sm:$0xff] (!%p1541_p5)  ;;  %v736_v38 = vld [vmem:[%s2570_s3 + $0x70] sm:$0xff] (!%p1541_p5) }
 0x1ba   : > { %1750 = vmatprep.mubr.bf16.mxu1 (!%p1541_p5), %v1990_v34  ;;  %1743 = vmatpush3.bf16.msra.mxu1 (!%p1541_p5), %v1983_v30  ;;  %v1987_v39 = vld [vmem:[#allocation9 + $0x30] sm:$0xff] (!%p1541_p5)   ;;  %v1989_v41 = vld [vmem:[#allocation9 + $0x38] sm:$0xff] (!%p1541_p5)   ;;  %v1992_v43 = vld [vmem:[%s2556_s15 + $0x8] sm:$0xff] (!%p1541_p5)  }
 0x1bb   : > { %v1724_v53 = vpop.f32.mrb[4].mxu0  ;;  %v1732_v54 = vpop.f32.mrb[4].mxu1  ;;  %705 = sbr.rel (%p1541_p5) target bundleno = 805 (0x325), region = 106  ;;  %805 = vperm.xlu1 (!%p1541_p5), %1974, %v735_v32   ;;  %1744 = vmatprep.subr.bf16.mxu1 (!%p1541_p5), %v1985_v35  ;;  %v1988_v40 = vld [vmem:[%s2829_s4 + $0x30] sm:$0xff] (!%p1541_p5)   ;;  %v1991_v42 = vld [vmem:[%s2829_s4 + $0x38] sm:$0xff] (!%p1541_p5)   ;;  %v1995_v46 = vld [vmem:[%s2556_s15 + $0x20] sm:$0xff] (!%p1541_p5)  }
 0x1bc   : > { %v676_v57 = vadd.f32 %v1724_v53, %v499_v49  ;;  %v684_v58 = vadd.f32 %v1732_v54, %v507_v50  ;;  %v623_v59 = vpop.f32.mrb[5].mxu0  ;;  %v655_v60 = vpop.f32.mrb[5].mxu1  ;;  %1775 = vmatpush3.bf16.msra.mxu0 (!%p1541_p5), %v1984_v31  ;;  %v1993_v44 = vld [vmem:[%s2556_s15 + $0x10] sm:$0xff] (!%p1541_p5)   ;;  %v1994_v45 = vld [vmem:[%s2556_s15 + $0x18] sm:$0xff] (!%p1541_p5)   ;;  %v1996_v47 = vld [vmem:[%s2556_s15 + $0x28] sm:$0xff] (!%p1541_p5)  }
 0x1bd   : > { %v674_v63 = vadd.f32 %v623_v59, %v497_v51  ;;  %v682_v0 = vadd.f32 %v655_v60, %v505_v52  ;;  %v1725_v1 = vpop.f32.mrb[6].mxu0  ;;  %v1733_v2 = vpop.f32.mrb[6].mxu1  ;;  %800 = vperm.xlu0 (!%p1541_p5), %1973, %v734_v33   ;;  %1776 = vmatprep.subr.bf16.mxu0 (!%p1541_p5), %v1986_v36  ;;  %v1997_v48 = vld [vmem:[%s2556_s15 + $0x30] sm:$0xff] (!%p1541_p5)   ;;  %v1998_v49 = vld [vmem:[%s2556_s15 + $0x38] sm:$0xff] (!%p1541_p5)  }
 0x1be   : > { %692 = vst [vmem:[#allocation2 + $0x30] sm:$0xff] %v676_v57  ;;  %700 = vst [vmem:[#allocation2 + $0x70] sm:$0xff] %v684_v58  ;;  %v677_v3 = vadd.f32 %v1725_v1, %v500_v55  ;;  %v685_v4 = vadd.f32 %v1733_v2, %v508_v56  ;;  %v626_v5 = vpop.f32.mrb[7].mxu0  ;;  %v658_v6 = vpop.f32.mrb[7].mxu1  ;;  %1745 = vmatpush3.bf16.msra.mxu1 (!%p1541_p5), %v1985_v35  ;;  %v708_v52 = vld [vmem:[#allocation2 + $0x10] sm:$0xff] (!%p1541_p5)  ;;  %v706_v53 = vld [vmem:[#allocation2] sm:$0xff] (!%p1541_p5) }
 0x1bf   : > { %690 = vst [vmem:[#allocation2 + $0x20] sm:$0xff] %v674_v63  ;;  %698 = vst [vmem:[#allocation2 + $0x60] sm:$0xff] %v682_v0  ;;  %v675_v7 = vadd.f32 %v626_v5, %v498_v61  ;;  %v683_v8 = vadd.f32 %v658_v6, %v506_v62  ;;  %815 = vperm.xlu1 (!%p1541_p5), %1974, %v737_v37   ;;  %1746 = vmatprep.subr.bf16.mxu1 (!%p1541_p5), %v1987_v39  ;;  %v751_v50 = vpop.permute.xlu1 (!%p1541_p5), %750  ;;  %v741_v51 = vpop.permute.xlu0 (!%p1541_p5), %740  ;;  %v709_v54 = vld [vmem:[#allocation2 + $0x18] sm:$0xff] (!%p1541_p5)  ;;  %v714_v14 = vld [vmem:[#allocation2 + $0x40] sm:$0xff] (!%p1541_p5) }
 0x1c0   : > { %693 = vst [vmem:[#allocation2 + $0x38] sm:$0xff] %v677_v3  ;;  %701 = vst [vmem:[#allocation2 + $0x78] sm:$0xff] %v685_v4  ;;  %1777 = vmatpush3.bf16.msra.mxu0 (!%p1541_p5), %v1986_v36  ;;  %v707_v55 = vld [vmem:[#allocation2 + $0x8] sm:$0xff] (!%p1541_p5)  ;;  %v820_v58 = vmul.f32 (!%p1541_p5), %v751_v50, %v708_v52  ;;  %v818_v59 = vmul.f32 (!%p1541_p5), %v741_v51, %v706_v53  ;;  %v717_v20 = vld [vmem:[#allocation2 + $0x58] sm:$0xff] (!%p1541_p5) }
 0x1c1   : > { %691 = vst [vmem:[#allocation2 + $0x28] sm:$0xff] %v675_v7  ;;  %699 = vst [vmem:[#allocation2 + $0x68] sm:$0xff] %v683_v8  ;;  %810 = vperm.xlu0 (!%p1541_p5), %1973, %v736_v38   ;;  %1778 = vmatprep.subr.bf16.mxu0 (!%p1541_p5), %v1988_v40  ;;  %v715_v13 = vld [vmem:[#allocation2 + $0x48] sm:$0xff] (!%p1541_p5)  ;;  %v716_v21 = vld [vmem:[#allocation2 + $0x50] sm:$0xff] (!%p1541_p5) }
 0x1c2   : > { %1747 = vmatpush3.bf16.msra.mxu1 %v1987_v39 }
 0x1c3   : > { %1748 = vmatprep.subr.bf16.mxu1 %v1989_v41  ;;  %v756_v56 = vpop.permute.xlu1 %755  ;;  %v746_v57 = vpop.permute.xlu0 %745 }
 0x1c4   : > { %1779 = vmatpush3.bf16.msra.mxu0 %v1988_v40  ;;  %v821_v60 = vmul.f32 %v756_v56, %v709_v54  ;;  %v819_v61 = vmul.f32 %v746_v57, %v707_v55 }
 0x1c5   : > { %1780 = vmatprep.subr.bf16.mxu0 %v1991_v42  ;;  %v712_v7 = vld [vmem:[#allocation2 + $0x30] sm:$0xff] }
 0x1c6   : > { %1749 = vmatpush3.bf16.msra.mxu1 %v1989_v41  ;;  %v710_v63 = vld [vmem:[#allocation2 + $0x20] sm:$0xff]  ;;  %v835_v0 = vpack.c.bf16 %v821_v60, %v820_v58  ;;  %v834_v1 = vpack.c.bf16 %v819_v61, %v818_v59  ;;  %v720_v35 = vld [vmem:[#allocation2 + $0x70] sm:$0xff] }
 0x1c7   : > { %v766_v2 = vpop.permute.xlu1 %765  ;;  %v761_v3 = vpop.permute.xlu0 %760  ;;  %v713_v6 = vld [vmem:[#allocation2 + $0x38] sm:$0xff]  ;;  %v718_v28 = vld [vmem:[#allocation2 + $0x60] sm:$0xff] }
 0x1c8   : > { %1781 = vmatpush3.bf16.msra.mxu0 %v1991_v42  ;;  %v711_v62 = vld [vmem:[#allocation2 + $0x28] sm:$0xff]  ;;  %v822_v5 = vmul.f32 %v761_v3, %v710_v63  ;;  %1782 = vmatprep.mubr.bf16.mxu0 %v834_v1  ;;  %v721_v34 = vld [vmem:[#allocation2 + $0x78] sm:$0xff]  ;;  %v2647_v59 = vld [vmem:[%s2830_s19] ss:$0 sm:$0xff] }
 0x1c9   : > { %1751 = vmatmul.mubr.bf16.vlgmr.msra.gmra.mrb[0].mxu1 %v1992_v43  ;;  %v823_v4 = vmul.f32 %v766_v2, %v711_v62  ;;  %v719_v27 = vld [vmem:[#allocation2 + $0x68] sm:$0xff] }
 0x1ca   : > { %1754 = vmatprep.mubr.bf16.mxu1 %v1993_v44 }
 0x1cb   : > { %1783 = vmatmul.mubr.bf16.vlgmr.msra.gmra.mrb[0].mxu0 %v835_v0  ;;  %v836_v8 = vpack.c.bf16 %v823_v4, %v822_v5  ;;  %v776_v9 = vpop.permute.xlu1 %775  ;;  %v771_v10 = vpop.permute.xlu0 %770 }
 0x1cc   : > { %v825_v11 = vmul.f32 %v776_v9, %v713_v6  ;;  %v824_v12 = vmul.f32 %v771_v10, %v712_v7 }
 0x1cd   : > { %1786 = vmatprep.mubr.bf16.mxu0 %v836_v8 }
 0x1ce   : > { %v837_v15 = vpack.c.bf16 %v825_v11, %v824_v12 }
 0x1cf   : > { %v786_v16 = vpop.permute.xlu1 %785 }
 0x1d0   : > { %v827_v18 = vmul.f32 %v786_v16, %v715_v13 }
 0x1d1   : > { %1755 = vmatmul.mubr.bf16.gmra.mrb[4].mxu1 %v1994_v45 }
 0x1d2   : > { %1758 = vmatprep.mubr.bf16.mxu1 %v1995_v46 }
 0x1d3   : > { %1787 = vmatmul.mubr.bf16.gmra.mrb[4].mxu0 %v837_v15 }
 0x1d9   : > { %1759 = vmatmul.mubr.bf16.gmra.mrb[8].mxu1 %v1996_v47 }
 0x1da   : > { %1762 = vmatprep.mubr.bf16.mxu1 %v1997_v48 }
 0x1e1   : > { %1763 = vmatmul.mubr.bf16.gmra.mrb[12].mxu1 %v1998_v49 }
 0x234   : > { %v781_v17 = vpop.permute.xlu0 %780 }
 0x235   : > { %v826_v19 = vmul.f32 %v781_v17, %v714_v14 }
 0x236   : > { %v796_v23 = vpop.permute.xlu1 %795 }
 0x237   : > { %v838_v22 = vpack.c.bf16 %v827_v18, %v826_v19  ;;  %v829_v25 = vmul.f32 %v796_v23, %v717_v20 }
 0x238   : > { %v791_v24 = vpop.permute.xlu0 %790 }
 0x239   : > { %v828_v26 = vmul.f32 %v791_v24, %v716_v21  ;;  %1790 = vmatprep.mubr.bf16.mxu0 %v838_v22 }
 0x23a   : > { %v806_v30 = vpop.permute.xlu1 %805 }
 0x23b   : > { %v839_v29 = vpack.c.bf16 %v829_v25, %v828_v26  ;;  %v831_v32 = vmul.f32 %v806_v30, %v719_v27 }
 0x23c   : > { %v801_v31 = vpop.permute.xlu0 %800 }
 0x23d   : > { %v830_v33 = vmul.f32 %v801_v31, %v718_v28  ;;  %1791 = vmatmul.mubr.bf16.gmra.mrb[8].mxu0 %v839_v29 }
 0x23e   : > { %v816_v37 = vpop.permute.xlu1 %815 }
 0x23f   : > { %v840_v36 = vpack.c.bf16 %v831_v32, %v830_v33  ;;  %v833_v39 = vmul.f32 %v816_v37, %v721_v34 }
 0x240   : > { %v811_v38 = vpop.permute.xlu0 %810 }
 0x241   : > { %v832_v40 = vmul.f32 %v811_v38, %v720_v35  ;;  %1794 = vmatprep.mubr.bf16.mxu0 %v840_v36 }
 0x243   : > { %v841_v41 = vpack.c.bf16 %v833_v39, %v832_v40 }
 0x245   : > { %1795 = vmatmul.mubr.bf16.gmra.mrb[12].mxu0 %v841_v41 }
 0x29c   : > { %v1752_v42 = vpop.f32.mrb[0].mxu1 }
 0x29d   : > { %v1020_v43 = vpop.f32.mrb[1].mxu1 }
 0x29e   : > { %v1753_v44 = vpop.f32.mrb[2].mxu1  ;;  %v1784_v58 = vpop.f32.mrb[0].mxu0 }
 0x29f   : > { %v1023_v45 = vpop.f32.mrb[3].mxu1  ;;  %v1174_v60 = vadd.f32 %v1784_v58, %v1752_v42  ;;  %v1165_v61 = vpop.f32.mrb[1].mxu0 }
 0x2a0   : > { %v1166_v62 = vadd.f32 %v1165_v61, %v1020_v43  ;;  %v1785_v63 = vpop.f32.mrb[2].mxu0 }
 0x2a1   : > { %v1237_v0 = vadd.f32 %v2647_v59, %v1174_v60  ;;  %v1177_v1 = vadd.f32 %v1785_v63, %v1753_v44  ;;  %v1168_v2 = vpop.f32.mrb[3].mxu0 }
 0x2a2   : > { %v1235_v3 = vadd.f32 %v2647_v59, %v1166_v62  ;;  %v1169_v4 = vadd.f32 %v1168_v2, %v1023_v45 }
 0x2a3   : > { %v1238_v5 = vadd.f32 %v2647_v59, %v1177_v1  ;;  %v1253_v7 = vmax.f32 %v1237_v0, 0.0 }
 0x2a4   : > { %v1756_v46 = vpop.f32.mrb[4].mxu1  ;;  %v1236_v6 = vadd.f32 %v2647_v59, %v1169_v4  ;;  %v1251_v9 = vmax.f32 %v1235_v3, 0.0 }
 0x2a5   : > { %v1036_v47 = vpop.f32.mrb[5].mxu1  ;;  %v1254_v8 = vmax.f32 %v1238_v5, 0.0 }
 0x2a6   : > { %v1757_v48 = vpop.f32.mrb[6].mxu1  ;;  %v1252_v10 = vmax.f32 %v1236_v6, 0.0  ;;  %v1788_v11 = vpop.f32.mrb[4].mxu0 }
 0x2a7   : > { %v1039_v49 = vpop.f32.mrb[7].mxu1  ;;  %v1615_v12 = vpack.c.bf16 %v1254_v8, %v1253_v7  ;;  %v1190_v13 = vadd.f32 %v1788_v11, %v1756_v46  ;;  %v1181_v14 = vpop.f32.mrb[5].mxu0 }
 0x2a8   : > { %v1610_v15 = vpack.c.bf16 %v1252_v10, %v1251_v9  ;;  %v1182_v16 = vadd.f32 %v1181_v14, %v1036_v47  ;;  %v1789_v17 = vpop.f32.mrb[6].mxu0 }
 0x2a9   : > { %1647 = vst [vmem:[%s2572_s25 + $0x8] sm:$0xff] %v1615_v12   ;;  %v1241_v18 = vadd.f32 %v2647_v59, %v1190_v13  ;;  %v1193_v19 = vadd.f32 %v1789_v17, %v1757_v48  ;;  %v1184_v20 = vpop.f32.mrb[7].mxu0 }
 0x2aa   : > { %1611 = vst [vmem:[%s2572_s25] sm:$0xff] %v1610_v15   ;;  %v1239_v21 = vadd.f32 %v2647_v59, %v1182_v16  ;;  %v1185_v22 = vadd.f32 %v1184_v20, %v1039_v49 }
 0x2ab   : > { %v1242_v23 = vadd.f32 %v2647_v59, %v1193_v19  ;;  %v1257_v25 = vmax.f32 %v1241_v18, 0.0 }
 0x2ac   : > { %v1760_v50 = vpop.f32.mrb[8].mxu1  ;;  %v1240_v24 = vadd.f32 %v2647_v59, %v1185_v22  ;;  %v1255_v27 = vmax.f32 %v1239_v21, 0.0 }
 0x2ad   : > { %v1052_v51 = vpop.f32.mrb[9].mxu1  ;;  %v1258_v26 = vmax.f32 %v1242_v23, 0.0 }
 0x2ae   : > { %v1761_v52 = vpop.f32.mrb[10].mxu1  ;;  %v1256_v28 = vmax.f32 %v1240_v24, 0.0 }
 0x2af   : > { %v1055_v53 = vpop.f32.mrb[11].mxu1  ;;  %v1625_v30 = vpack.c.bf16 %v1258_v26, %v1257_v25 }
 0x2b0   : > { %v1620_v33 = vpack.c.bf16 %v1256_v28, %v1255_v27 }
 0x2b1   : > { %1649 = vst [vmem:[%s2572_s25 + $0x18] sm:$0xff] %v1625_v30  }
 0x2b2   : > { %1648 = vst [vmem:[%s2572_s25 + $0x10] sm:$0xff] %v1620_v33  }
 0x2b4   : > { %v2636_v54 = vpop.f32.mrb[12].mxu1 }
 0x2b5   : > { %v2638_v55 = vpop.f32.mrb[13].mxu1 }
 0x2b6   : > { %v2640_v56 = vpop.f32.mrb[14].mxu1 }
 0x2b7   : > { %v2642_v57 = vpop.f32.mrb[15].mxu1 }
 0x310   : > { %v1792_v29 = vpop.f32.mrb[8].mxu0 }
 0x311   : > { %v1206_v31 = vadd.f32 %v1792_v29, %v1760_v50  ;;  %v1197_v32 = vpop.f32.mrb[9].mxu0 }
 0x312   : > { %v1198_v34 = vadd.f32 %v1197_v32, %v1052_v51  ;;  %v1793_v35 = vpop.f32.mrb[10].mxu0 }
 0x313   : > { %v1245_v36 = vadd.f32 %v2647_v59, %v1206_v31  ;;  %v1209_v37 = vadd.f32 %v1793_v35, %v1761_v52  ;;  %v1200_v38 = vpop.f32.mrb[11].mxu0 }
 0x314   : > { %v1243_v39 = vadd.f32 %v2647_v59, %v1198_v34  ;;  %v1201_v40 = vadd.f32 %v1200_v38, %v1055_v53 }
 0x315   : > { %v1246_v41 = vadd.f32 %v2647_v59, %v1209_v37  ;;  %v1261_v43 = vmax.f32 %v1245_v36, 0.0 }
 0x316   : > { %v1244_v42 = vadd.f32 %v2647_v59, %v1201_v40  ;;  %v1259_v45 = vmax.f32 %v1243_v39, 0.0 }
 0x317   : > { %v1262_v44 = vmax.f32 %v1246_v41, 0.0 }
 0x318   : > { %v1260_v46 = vmax.f32 %v1244_v42, 0.0  ;;  %v1796_v47 = vpop.f32.mrb[12].mxu0 }
 0x319   : > { %v1635_v48 = vpack.c.bf16 %v1262_v44, %v1261_v43  ;;  %v1222_v49 = vadd.f32 %v1796_v47, %v2636_v54  ;;  %v1213_v50 = vpop.f32.mrb[13].mxu0 }
 0x31a   : > { %v1630_v51 = vpack.c.bf16 %v1260_v46, %v1259_v45  ;;  %v1214_v52 = vadd.f32 %v1213_v50, %v2638_v55  ;;  %v1797_v58 = vpop.f32.mrb[14].mxu0 }
 0x31b   : > { %1651 = vst [vmem:[%s2572_s25 + $0x28] sm:$0xff] %v1635_v48   ;;  %v1249_v53 = vadd.f32 %v2647_v59, %v1222_v49  ;;  %v1225_v60 = vadd.f32 %v1797_v58, %v2640_v56  ;;  %v1216_v61 = vpop.f32.mrb[15].mxu0 }
 0x31c   : > { %1650 = vst [vmem:[%s2572_s25 + $0x20] sm:$0xff] %v1630_v51   ;;  %v1247_v62 = vadd.f32 %v2647_v59, %v1214_v52  ;;  %v1217_v63 = vadd.f32 %v1216_v61, %v2642_v57 }
 0x31d   : > { %v1250_v54 = vadd.f32 %v2647_v59, %v1225_v60  ;;  %v1265_v1 = vmax.f32 %v1249_v53, 0.0 }
 0x31e   : > { %v1248_v0 = vadd.f32 %v2647_v59, %v1217_v63  ;;  %v1263_v2 = vmax.f32 %v1247_v62, 0.0 }
 0x31f   : > { %v1266_v55 = vmax.f32 %v1250_v54, 0.0 }
 0x320   : > { %v1264_v3 = vmax.f32 %v1248_v0, 0.0 }
 0x321   : > { %v1645_v4 = vpack.c.bf16 %v1266_v55, %v1265_v1 }
 0x322   : > { %v1640_v5 = vpack.c.bf16 %v1264_v3, %v1263_v2 }
 0x323   : > { %1653 = vst [vmem:[%s2572_s25 + $0x38] sm:$0xff] %v1645_v4  }
 0x324   : > { %1652 = vst [vmem:[%s2572_s25 + $0x30] sm:$0xff] %v1640_v5  }
 0x325 PF: > { %s2831_s23 = sld [smem:[#allocation18_spill]]  ;;  %s2833_s9 = sld [smem:[#allocation25_spill]] }
 0x326   : > { %s2834_s7 = sld [smem:[#allocation30_spill]]  ;;  %s1361_s20 = sshll.u32 %s2572_s25, 4  ;;  %s2684_s20 = int_to_ptr.vmem [resolvable:$true] %s1361_s20 }
 0x327   : > { %s2688_s17 = scalar_lea.sflag [#allocation6], %s399_s24  ;;  %s2083_s10 = scalar_lea.vmem %s2684_s20, 1024 }
 0x328   : > { %p2084_p3 = scmp.ne.s32.totalorder %s2684_s20, %s2083_s10  ;;  %s2240_s27 = smov [#allocation10]  }
 0x329   : > { %s2087_s3 = sshll.u32 %s2240_s27, 4  ;;  %s2088_s3 = int_to_ptr.vmem [resolvable:$false] %s2087_s3 }
 0x32a   : > { %s2089_s14 = scalar_lea.vmem %s2088_s3, 2048  ;;  %p2090_p11 = scmp.lt.s32.totalorder %s2684_s20, %s2088_s3 }
 0x32b   : > { %s1606_s30 = sshll.u32 %s2831_s23, 10  ;;  %p2835_p12 = scmp.ne.s32.totalorder %s2833_s9, 0 }
 0x32c   : > { %s2681_s22 = scalar_lea.hbm %s2834_s7, %s1606_s30  ;;  %p2091_p4 = scmp.lt.s32.totalorder %s2089_s14, %s2083_s10 }
 0x32d   : > { %p2085_p9 = pnand %p2084_p3, %p2835_p12 }
 0x32e   : > { %p2092_p13 = por %p2091_p4, %p2090_p11 }
 0x32f   : > { %p2086_p7 = pneg %p2085_p9 }
 0x331   : > { %p2093_p8 = pnand %p2092_p13, %p2086_p7 }
 0x333   : > { %2096 = shalt.err (!%p2093_p8)
}
 0x334   : > { %s2097_s24 = scalar_lea.hbm %s2681_s22, 1024  ;;  %s2101_s6 = scalar_lea.hbm %s2834_s7, 3072 }
 0x335   : > { %p2098_p0 = scmp.ne.s32.totalorder %s2681_s22, %s2097_s24  ;;  %p2102_p2 = scmp.lt.u32.totalorder %s2681_s22, %s2834_s7 }
 0x336   : > { %p2103_p1 = scmp.lt.u32.totalorder %s2101_s6, %s2097_s24  ;;  %p2105_p3 = scmp.lt.u32.totalorder %s2097_s24, %s2681_s22 }
 0x337   : > { %p2099_p10 = pnand %p2098_p0, %p2835_p12 }
 0x338   : > { %p2104_p5 = por %p2103_p1, %p2102_p2 }
 0x339   : > { %p2100_p6 = pneg %p2099_p10 }
 0x33a   : > { %p2106_p9 = por %p2105_p3, %p2104_p5 }
 0x33c   : > { %p2107_p7 = pnand %p2106_p9, %p2100_p6 }
 0x33e   : > { %2110 = shalt.err (!%p2107_p7)
}
 0x33f   : > { %s2241_s16 = smov 64   ;;  %s2242_s30 = smov 4  }
 0x340   : > { %1839 = dma.vmem_to_hbm [thread:$0]  (%p2835_p12), %s2684_s20, 1024, %s2681_s22, %s2688_s17, %s2241_s16, %s2241_s16, %s2242_s30  }
 0x341 PF: > { %s2836_s18 = sld [smem:[#allocation15_spill]]  ;;  %s2837_s21 = sld [smem:[#allocation26_spill]] }
 0x342   : > { %p1851_p11 = scmp.ge.s32.totalorder %s2229_s13, 2 }
 0x347   : > { %s1376_s10 = sand.u32 1, %s2836_s18   ;;  %p2838_p4 = scmp.ne.s32.totalorder %s2837_s21, 0 }
 0x348   : > { %s1377_s27 = scalar_lea.sflag [#allocation6], %s1376_s10 }
 0x349   : > { %p1846_p13 = pnand %p1851_p11, %p2838_p4 }
 0x34b   : > { %2176 = dma.done.wait (!%p1846_p13), %s1377_s27, 1024  }
 0x34c   : > { %2178 = vsyncadd (!%p1846_p13), %s1377_s27, 4294966272  ;;  %s26_s13 = sadd.s32 1, %s2229_s13   ;;  %s2840_s24 = sld [smem:[#allocation16_spill]] }
 0x34d   : > { %p2717_p8 = scmp.ge.s32.totalorder %s26_s13, 11   ;;  %s2841_s9 = sld [smem:[#allocation23_spill]] }
 0x34e   : > { %s2842_s22 = sld [smem:[#allocation21_spill]]  ;;  %s2843_s20 = sld [smem:[#allocation22_spill]] }
 0x34f   : > { %s2844_s17 = sld [smem:[#allocation19_spill]]  ;;  %s2845_s14 = sld [smem:[#allocation20_spill]] }
 0x350   : > { %s2846_s25 = smov %s2189_s26  ;;  %s2848_s27 = smov %s2197_s28 }
 0x351   : > { %s2849_s28 = smov %s2201_s29  ;;  %s2851_s30 = smov %s2209_s8 }
 0x352   : > { %s2854_s10 = smov %s2225_s12  ;;  %25 = sbr.rel (!%p2717_p8) target bundleno = 17 (0x11), region = 167 }
 0x353   : > { %s2847_s26 = smov %s2841_s9  ;;  %s2853_s9 = smov %s2221_s11 }
 0x354   : > { %s2850_s29 = smov %s2842_s22  ;;  %s2852_s8 = smov %s2843_s20 }
 0x355   : > { %s2855_s11 = smov %s2844_s17  ;;  %s2856_s12 = smov %s2845_s14 }
 0x359   :  { %1382 = vsyncpa [#allocation5], 1 }
 0x35a   :  { %1384 = vsyncpa [#allocation5 + $0x1], 1 }
 0x35b   :  { %1385 = vsyncpa [#allocation8], 1 }
 0x35c   :  { %1387 = vsyncpa [#allocation8 + $0x1], 1 }
 0x35d   :  { %1388 = vsyncpa [#allocation6], 1 }
 0x35e   :  { %1390 = vsyncpa [#allocation6 + $0x1], 1 }

</bundles_post_ra>
